<compile_context>
chip_gen: v7x
topology: tpu7x:2x2x1
jax: 0.10.0
libtpu: 0.0.40
codegen_flags: <defaults>
</compile_context>

<pallas_src>
import functools

import jax
import jax.numpy as jnp
from jax.experimental import pallas as pl
from jax.experimental.pallas import tpu as pltpu

LANE = 128  # TPU lane width; output classes are padded to this.


def mlp_kernel(x_ref, w1_ref, b1_ref, w2_ref, b2_ref, w3_ref, b3_ref, o_ref):
    # x tile: (TB, in_sz) bf16; weights bf16; biases f32; accumulate in f32 on MXU.
    x = x_ref[...]
    h1 = jnp.dot(x, w1_ref[...], preferred_element_type=jnp.float32) + b1_ref[...]
    h1 = jnp.maximum(h1, 0.0).astype(jnp.bfloat16)
    h2 = jnp.dot(h1, w2_ref[...], preferred_element_type=jnp.float32) + b2_ref[...]
    h2 = jnp.maximum(h2, 0.0).astype(jnp.bfloat16)
    # Fuse bias add + cast into the (lane-dense, 128-wide) output store.
    o_ref[...] = (
        jnp.dot(h2, w3_ref[...], preferred_element_type=jnp.float32) + b3_ref[...]
    ).astype(o_ref.dtype)


@functools.partial(jax.jit, static_argnames=("tb",))
def mlp_forward(x, w1, b1, w2, b2, w3, b3, *, tb=512):
    """Forward pass of fc1->ReLU->fc2->ReLU->fc3.

    x:  (B, inputSz) f32
    w_i: (in, out) f32  (transposed vs. torch.nn.Linear weight layout)
    b_i: (1, out)  f32
    Returns (B, numClasses) f32.
    """
    B, in_sz = x.shape
    num_classes = w3.shape[1]

    # --- lane-dense output: pad class dim to 128 with zero weight/bias cols ---
    nc_pad = max(LANE, num_classes)
    if w3.shape[1] < nc_pad:
        w3 = jnp.pad(w3, ((0, 0), (0, nc_pad - w3.shape[1])))
        b3 = jnp.pad(b3, ((0, 0), (0, nc_pad - b3.shape[1])))

    # --- batch tile: multiple of 8 sublanes, padded batch if needed ---
    tb = min(tb, B)
    tb = max(8, (tb // 8) * 8)
    Bp = pl.cdiv(B, tb) * tb
    if Bp != B:
        x = jnp.pad(x, ((0, Bp - B), (0, 0)))

    # --- bf16 operands (MXU-native), f32 accumulation inside the kernel ---
    xb = x.astype(jnp.bfloat16)
    w1b = w1.astype(jnp.bfloat16)
    w2b = w2.astype(jnp.bfloat16)
    w3b = w3.astype(jnp.bfloat16)

    grid = (Bp // tb,)
    resident = lambda a: pl.BlockSpec(a.shape, lambda i: (0, 0))  # stays in VMEM

    out = pl.pallas_call(
        mlp_kernel,
        out_shape=jax.ShapeDtypeStruct((Bp, nc_pad), jnp.float32),
        grid=grid,
        in_specs=[
            pl.BlockSpec((tb, in_sz), lambda i: (i, 0)),  # x: batch-tiled
            resident(w1b), resident(b1),
            resident(w2b), resident(b2),
            resident(w3b), resident(b3),
        ],
        out_specs=pl.BlockSpec((tb, nc_pad), lambda i: (i, 0)),
        compiler_params=pltpu.CompilerParams(
            dimension_semantics=("parallel",),  # shard batch steps across TCs on v7x
        ),
    )(xb, w1b, b1, w2b, b2, w3b, b3)

    return out[:B, :num_classes]


def init_linear(key, in_features, out_features):
    # Deterministic init mimicking torch.nn.Linear default (uniform +/- 1/sqrt(in)).
    kw, kb = jax.random.split(key)
    bound = 1.0 / jnp.sqrt(jnp.float32(in_features))
    # Stored as (in, out): transpose of torch's (out, in) weight layout.
    w = jax.random.uniform(kw, (in_features, out_features), jnp.float32, -bound, bound)
    b = jax.random.uniform(kb, (1, out_features), jnp.float32, -bound, bound)
    return w, b


def reference_forward_f32(x, w1, b1, w2, b2, w3, b3):
    h1 = jnp.maximum(x @ w1 + b1, 0.0)
    h2 = jnp.maximum(h1 @ w2 + b2, 0.0)
    return h2 @ w3 + b3


def reference_forward_bf16(x, w1, b1, w2, b2, w3, b3):
    # Mirrors the kernel's dtype strategy (bf16 operands, f32 accumulation).
    f32 = jnp.float32
    bf16 = jnp.bfloat16
    h1 = jnp.maximum(
        jnp.dot(x.astype(bf16), w1.astype(bf16), preferred_element_type=f32) + b1, 0.0
    ).astype(bf16)
    h2 = jnp.maximum(
        jnp.dot(h1, w2.astype(bf16), preferred_element_type=f32) + b2, 0.0
    ).astype(bf16)
    return jnp.dot(h2, w3.astype(bf16), preferred_element_type=f32) + b3


if __name__ == "__main__":
    # Small shapes consistent with the module's forward: (batch, inputSz).
    batch, input_sz, h1_sz, h2_sz, num_classes = 256, 32, 64, 32, 2
    tb = 128  # 2 grid steps -> exercises pipelining / parallel axis

    key = jax.random.PRNGKey(0)
    kx, k1, k2, k3 = jax.random.split(key, 4)

    x = jax.random.normal(kx, (batch, input_sz), jnp.float32)
    w1, b1 = init_linear(k1, input_sz, h1_sz)
    w2, b2 = init_linear(k2, h1_sz, h2_sz)
    w3, b3 = init_linear(k3, h2_sz, num_classes)

    out = mlp_forward(x, w1, b1, w2, b2, w3, b3, tb=tb)
    out = jax.block_until_ready(out)
    assert out.shape == (batch, num_classes), out.shape

    # Tight check vs a reference using the same bf16-operand / f32-accum recipe.
    ref_bf16 = reference_forward_bf16(x, w1, b1, w2, b2, w3, b3)
    assert jnp.allclose(out, ref_bf16, atol=2e-3, rtol=2e-3), "mismatch vs bf16 reference"

    # Loose check vs the exact f32 semantics of the original PyTorch module.
    ref_f32 = reference_forward_f32(x, w1, b1, w2, b2, w3, b3)
    assert jnp.allclose(out, ref_f32, atol=5e-2, rtol=5e-2), "mismatch vs f32 reference"

    print("KERNEL_OK")
</pallas_src>

<mosaic_0001>
module attributes {stable_mosaic.version = 11 : i64} {
  func.func @mlp_kernel(%arg0: i32, %arg1: memref<128x32xbf16, #tpu.memory_space<vmem>>, %arg2: memref<32x64xbf16, #tpu.memory_space<vmem>>, %arg3: memref<1x64xf32, #tpu.memory_space<vmem>>, %arg4: memref<64x32xbf16, #tpu.memory_space<vmem>>, %arg5: memref<1x32xf32, #tpu.memory_space<vmem>>, %arg6: memref<32x128xbf16, #tpu.memory_space<vmem>>, %arg7: memref<1x128xf32, #tpu.memory_space<vmem>>, %arg8: memref<128x128xf32, #tpu.memory_space<vmem>>) attributes {dimension_semantics = [#tpu.dimension_semantics<parallel>], iteration_bounds = array<i64: 2>, scalar_prefetch = 0 : i64, scratch_operands = 0 : i64, tpu.core_type = #tpu.core_type<tc>, window_params = [{transform_indices = @transform_0, window_bounds = array<i64: 128, 32>}, {pipeline_mode = #tpu.pipeline_mode<synchronous>, transform_indices = @transform_1, window_bounds = array<i64: 32, 64>}, {pipeline_mode = #tpu.pipeline_mode<synchronous>, transform_indices = @transform_2, window_bounds = array<i64: 1, 64>}, {pipeline_mode = #tpu.pipeline_mode<synchronous>, transform_indices = @transform_3, window_bounds = array<i64: 64, 32>}, {pipeline_mode = #tpu.pipeline_mode<synchronous>, transform_indices = @transform_4, window_bounds = array<i64: 1, 32>}, {pipeline_mode = #tpu.pipeline_mode<synchronous>, transform_indices = @transform_5, window_bounds = array<i64: 32, 128>}, {pipeline_mode = #tpu.pipeline_mode<synchronous>, transform_indices = @transform_6, window_bounds = array<i64: 1, 128>}, {transform_indices = @transform_7, window_bounds = array<i64: 128, 128>}]} {
    %c0 = arith.constant 0 : index
    %c0_0 = arith.constant 0 : index
    %0 = vector.load %arg1[%c0, %c0_0] : memref<128x32xbf16, #tpu.memory_space<vmem>>, vector<128x32xbf16>
    %c0_1 = arith.constant 0 : index
    %c0_2 = arith.constant 0 : index
    %1 = vector.load %arg2[%c0_1, %c0_2] : memref<32x64xbf16, #tpu.memory_space<vmem>>, vector<32x64xbf16>
    %cst = arith.constant dense<0.000000e+00> : vector<128x64xf32>
    %2 = tpu.matmul %0, %1, %cst {dimension_numbers = #tpu.dot_dimension_numbers<[1], [0], [0], [1], [0, 0, 1, 1], [], []>} : vector<128x32xbf16>, vector<32x64xbf16>, vector<128x64xf32> -> vector<128x64xf32>
    %c0_3 = arith.constant 0 : index
    %c0_4 = arith.constant 0 : index
    %3 = vector.load %arg3[%c0_3, %c0_4] : memref<1x64xf32, #tpu.memory_space<vmem>>, vector<1x64xf32>
    %4 = vector.broadcast %3 : vector<1x64xf32> to vector<128x64xf32>
    %5 = arith.addf %2, %4 : vector<128x64xf32>
    %cst_5 = arith.constant 0.000000e+00 : f32
    %6 = vector.broadcast %cst_5 : f32 to vector<128x64xf32>
    %7 = arith.maximumf %5, %6 : vector<128x64xf32>
    %8 = arith.truncf %7 : vector<128x64xf32> to vector<128x64xbf16>
    %c0_6 = arith.constant 0 : index
    %c0_7 = arith.constant 0 : index
    %9 = vector.load %arg4[%c0_6, %c0_7] : memref<64x32xbf16, #tpu.memory_space<vmem>>, vector<64x32xbf16>
    %cst_8 = arith.constant dense<0.000000e+00> : vector<128x32xf32>
    %10 = tpu.matmul %8, %9, %cst_8 {dimension_numbers = #tpu.dot_dimension_numbers<[1], [0], [0], [1], [0, 0, 1, 1], [], []>} : vector<128x64xbf16>, vector<64x32xbf16>, vector<128x32xf32> -> vector<128x32xf32>
    %c0_9 = arith.constant 0 : index
    %c0_10 = arith.constant 0 : index
    %11 = vector.load %arg5[%c0_9, %c0_10] : memref<1x32xf32, #tpu.memory_space<vmem>>, vector<1x32xf32>
    %12 = vector.broadcast %11 : vector<1x32xf32> to vector<128x32xf32>
    %13 = arith.addf %10, %12 : vector<128x32xf32>
    %cst_11 = arith.constant 0.000000e+00 : f32
    %14 = vector.broadcast %cst_11 : f32 to vector<128x32xf32>
    %15 = arith.maximumf %13, %14 : vector<128x32xf32>
    %16 = arith.truncf %15 : vector<128x32xf32> to vector<128x32xbf16>
    %c0_12 = arith.constant 0 : index
    %c0_13 = arith.constant 0 : index
    %17 = vector.load %arg6[%c0_12, %c0_13] : memref<32x128xbf16, #tpu.memory_space<vmem>>, vector<32x128xbf16>
    %cst_14 = arith.constant dense<0.000000e+00> : vector<128x128xf32>
    %18 = tpu.matmul %16, %17, %cst_14 {dimension_numbers = #tpu.dot_dimension_numbers<[1], [0], [0], [1], [0, 0, 1, 1], [], []>} : vector<128x32xbf16>, vector<32x128xbf16>, vector<128x128xf32> -> vector<128x128xf32>
    %c0_15 = arith.constant 0 : index
    %c0_16 = arith.constant 0 : index
    %19 = vector.load %arg7[%c0_15, %c0_16] : memref<1x128xf32, #tpu.memory_space<vmem>>, vector<1x128xf32>
    %20 = vector.broadcast %19 : vector<1x128xf32> to vector<128x128xf32>
    %21 = arith.addf %18, %20 : vector<128x128xf32>
    %c0_17 = arith.constant 0 : index
    %c0_18 = arith.constant 0 : index
    %22 = vector.load %arg8[%c0_17, %c0_18] : memref<128x128xf32, #tpu.memory_space<vmem>>, vector<128x128xf32>
    tpu.vector_store %arg8[%c0_17, %c0_18], %21 {strides = array<i32>} : memref<128x128xf32, #tpu.memory_space<vmem>>, vector<128x128xf32>,
    return
  }
  func.func @transform_0(%arg0: i32) -> (i32, i32) {
    %c0_i32 = arith.constant 0 : i32
    %c0_i32_0 = arith.constant 0 : i32
    return %arg0, %c0_i32 : i32, i32
  }
  func.func @transform_1(%arg0: i32) -> (i32, i32) {
    %c0_i32 = arith.constant 0 : i32
    %c0_i32_0 = arith.constant 0 : i32
    %c0_i32_1 = arith.constant 0 : i32
    return %c0_i32, %c0_i32_0 : i32, i32
  }
  func.func @transform_2(%arg0: i32) -> (i32, i32) {
    %c0_i32 = arith.constant 0 : i32
    %c0_i32_0 = arith.constant 0 : i32
    %c0_i32_1 = arith.constant 0 : i32
    return %c0_i32, %c0_i32_0 : i32, i32
  }
  func.func @transform_3(%arg0: i32) -> (i32, i32) {
    %c0_i32 = arith.constant 0 : i32
    %c0_i32_0 = arith.constant 0 : i32
    %c0_i32_1 = arith.constant 0 : i32
    return %c0_i32, %c0_i32_0 : i32, i32
  }
  func.func @transform_4(%arg0: i32) -> (i32, i32) {
    %c0_i32 = arith.constant 0 : i32
    %c0_i32_0 = arith.constant 0 : i32
    %c0_i32_1 = arith.constant 0 : i32
    return %c0_i32, %c0_i32_0 : i32, i32
  }
  func.func @transform_5(%arg0: i32) -> (i32, i32) {
    %c0_i32 = arith.constant 0 : i32
    %c0_i32_0 = arith.constant 0 : i32
    %c0_i32_1 = arith.constant 0 : i32
    return %c0_i32, %c0_i32_0 : i32, i32
  }
  func.func @transform_6(%arg0: i32) -> (i32, i32) {
    %c0_i32 = arith.constant 0 : i32
    %c0_i32_0 = arith.constant 0 : i32
    %c0_i32_1 = arith.constant 0 : i32
    return %c0_i32, %c0_i32_0 : i32, i32
  }
  func.func @transform_7(%arg0: i32) -> (i32, i32) {
    %c0_i32 = arith.constant 0 : i32
    %c0_i32_0 = arith.constant 0 : i32
    return %arg0, %c0_i32 : i32, i32
  }
}

</mosaic_0001>

<bundles_post_ra>
// kernel: mlp_forward.1
= control target key start
LH: loop header
LB: loop body
LE: loop exit
PB: predicated region body
PF: predicated region fallthrough
CT: control target
= control target key end

     0   :  { %s1135_s24 = smov 0   ;;  %s1231_s0 = inlined_call_operand.vmem [shape: bf16[256,32], index: 0, kind: input, shape index: {}]   ;;  %s1232_s1 = inlined_call_operand.vmem [shape: bf16[32,64], index: 1, kind: input, shape index: {}]   ;;  %s1233_s2 = inlined_call_operand.vmem [shape: f32[1,64], index: 2, kind: input, shape index: {}]   ;;  %s1234_s3 = inlined_call_operand.vmem [shape: bf16[64,32], index: 3, kind: input, shape index: {}]   ;;  %s1235_s4 = inlined_call_operand.vmem [shape: f32[1,32], index: 4, kind: input, shape index: {}]   ;;  %s1236_s5 = inlined_call_operand.vmem [shape: bf16[32,128], index: 5, kind: input, shape index: {}]   ;;  %s1237_s6 = inlined_call_operand.vmem [shape: f32[1,128], index: 6, kind: input, shape index: {}]   ;;  %s1238_s7 = inlined_call_operand.vmem [shape: f32[256,128], index: 7, kind: output, shape index: {}]  }
   0x1 LB: > { %s909_s25 = sadd.s32 4294967295, %s1093_s24   ;;  %p913_p0 = scmp.ge.s32.totalorder %s1093_s24, 1  ;;  %s1093_s24 = sphi %s1135_s24, %s17_s24  }
   0x2   : > { %p238_p1 = scmp.lt.s32.totalorder %s1093_s24, 3 }
   0x4   : > { %p239_p2 = pnand %p913_p0, %p238_p1 }
   0x5   : > { %v1071_v0 = vld [vmem:[%s1232_s1] sm:$0xff] (!%p239_p2)   ;;  %s914_s28 = sshll.u32 (!%p239_p2), %s909_s25, 4  ;;  %v1072_v1 = vld [vmem:[%s1232_s1 + $0x8] sm:$0xff] (!%p239_p2)   ;;  %vm362_vm0 = vcmask (!%p239_p2), 261120   ;;  %v1083_v12 = vld [vmem:[%s1234_s3 + $0x10] sm:$0xff] (!%p239_p2)   ;;  %vm547_vm1 = vcmask (!%p239_p2), 523264  }
   0x6   : > { %242 = sbr.rel (%p239_p2) target bundleno = 704 (0x2c0), region = 48  ;;  %p271_p3 = scmp.lt.s32.totalorder (!%p239_p2), %s914_s28, 31  ;;  %995 = vmatprep.subr.bf16.mxu0 (!%p239_p2), %v1071_v0  ;;  %1059 = vmatprep.subr.bf16.mxu1 (!%p239_p2), %v1071_v0  ;;  %v1081_v2 = vld [vmem:[%s1234_s3] sm:$0xff] (!%p239_p2)   ;;  %v1082_v6 = vld [vmem:[%s1234_s3 + $0x8] sm:$0xff] (!%p239_p2)   ;;  %v1084_v13 = vld [vmem:[%s1234_s3 + $0x18] sm:$0xff] (!%p239_p2)  }
   0x7   : > { %996 = vmatpush3.bf16.msra.mxu0 (!%p239_p2), %v1071_v0  ;;  %1061 = vmatpush3.bf16.msra.mxu1 (!%p239_p2), %v1071_v0  ;;  %v1085_v14 = vld [vmem:[%s1236_s5] sm:$0xff] (!%p239_p2)  }
   0x8   : > { %997 = vmatprep.subr.bf16.mxu0 (!%p239_p2), %v1072_v1  ;;  %1060 = vmatprep.subr.bf16.mxu1 (!%p239_p2), %v1072_v1  ;;  %v918_v15 = vld [vmem:[%s1233_s2] ss:$0 sm:$0xff] (!%p239_p2) }
   0xb   : > { %998 = vmatpush3.bf16.msra.mxu0 (!%p239_p2), %v1072_v1  ;;  %1062 = vmatpush3.bf16.msra.mxu1 (!%p239_p2), %v1072_v1 }
   0xc   : > { %1015 = vmatprep.subr.bf16.mxu1 (!%p239_p2), %v1081_v2  ;;  %1039 = vmatprep.subr.bf16.mxu0 (!%p239_p2), %v1085_v14 }
   0xd   : > { %s1240_s28 = smov (!%p271_p3, %s914_s28), 31 }
   0xe   : > { %s915_s10 = sshll.u32 %s1240_s28, 2  ;;  %s917_s30 = sshll.u32 %s1240_s28, 3 }
   0xf   : > { %s274_s13 = scalar_lea.vmem %s1231_s0, %s915_s10  ;;  %s1210_s12 = scalar_lea.vmem %s1238_s7, %s917_s30 }
  0x10   : > { %v1073_v3 = vld [vmem:[%s274_s13] sm:$0xff]   ;;  %v1074_v4 = vld [vmem:[%s274_s13 + $0x8] sm:$0xff]   ;;  %v1075_v5 = vld [vmem:[%s274_s13 + $0x10] sm:$0xff]  }
  0x11   : > { %999 = vmatprep.mubr.msk.bf16.mxu0 %vm362_vm0, %v1073_v3  ;;  %v1077_v7 = vld [vmem:[%s274_s13 + $0x20] sm:$0xff]   ;;  %v1078_v8 = vld [vmem:[%s274_s13 + $0x28] sm:$0xff]   ;;  %v1079_v9 = vld [vmem:[%s274_s13 + $0x30] sm:$0xff]  }
  0x12   : > { %1000 = vmatmul.mubr.msk.bf16.vlgmr.msra.gmra.mrb[0].mxu0 %vm362_vm0, %v1074_v4  ;;  %1007 = vmatprep.mubr.msk.bf16.mxu1 %vm362_vm0, %v1077_v7  ;;  %v1076_v10 = vld [vmem:[%s274_s13 + $0x18] sm:$0xff]  }
  0x13   : > { %1003 = vmatprep.mubr.msk.bf16.mxu0 %vm362_vm0, %v1075_v5  ;;  %1008 = vmatmul.mubr.msk.bf16.vlgmr.msra.gmra.mrb[0].mxu1 %vm362_vm0, %v1078_v8  ;;  %v1080_v11 = vld [vmem:[%s274_s13 + $0x38] sm:$0xff]   ;;  %v1086_v8 = vld [vmem:[%s1236_s5 + $0x8] sm:$0xff]  }
  0x14   : > { %1011 = vmatprep.mubr.msk.bf16.mxu1 %vm362_vm0, %v1079_v9  ;;  %1016 = vmatpush3.bf16.msra.mxu1 %v1081_v2  ;;  %v937_v9 = vld [vmem:[%s1235_s4] ss:$0 sm:$0xff] }
  0x15   : > { %1017 = vmatprep.subr.bf16.mxu1 %v1082_v6  ;;  %1040 = vmatpush3.bf16.msra.mxu0 %v1085_v14 }
  0x16   : > { %1041 = vmatprep.subr.bf16.mxu0 %v1086_v8 }
  0x18   : > { %1018 = vmatpush3.bf16.msra.mxu1 %v1082_v6 }
  0x19   : > { %1019 = vmatprep.subr.bf16.mxu1 %v1083_v12  ;;  %1042 = vmatpush3.bf16.msra.mxu0 %v1086_v8 }
  0x1a   : > { %1004 = vmatmul.mubr.msk.bf16.gmra.mrb[4].mxu0 %vm362_vm0, %v1076_v10 }
  0x1b   : > { %1012 = vmatmul.mubr.msk.bf16.gmra.mrb[4].mxu1 %vm362_vm0, %v1080_v11 }
  0x1c   : > { %1020 = vmatpush3.bf16.msra.mxu1 %v1083_v12 }
  0x1d   : > { %1021 = vmatprep.subr.bf16.mxu1 %v1084_v13 }
  0x20   : > { %1022 = vmatpush3.bf16.msra.mxu1 %v1084_v13 }
  0xe5   : > { %v1001_v16 = vpop.f32.mrb[0].mxu0 }
  0xe6   : > { %v430_v17 = vadd.f32 %v1001_v16, %v918_v15  ;;  %v421_v18 = vpop.f32.mrb[1].mxu0  ;;  %v1009_v24 = vpop.f32.mrb[0].mxu1 }
  0xe7   : > { %v422_v19 = vadd.f32 %v918_v15, %v421_v18  ;;  %v1002_v20 = vpop.f32.mrb[2].mxu0  ;;  %v462_v27 = vadd.f32 %v1009_v24, %v918_v15  ;;  %v453_v28 = vpop.f32.mrb[1].mxu1 }
  0xe8   : > { %v433_v21 = vadd.f32 %v1002_v20, %v918_v15  ;;  %v424_v22 = vpop.f32.mrb[3].mxu0  ;;  %v486_v25 = vmax.f32 %v430_v17, 0.0  ;;  %v454_v31 = vadd.f32 %v918_v15, %v453_v28  ;;  %v1010_v32 = vpop.f32.mrb[2].mxu1 }
  0xe9   : > { %v425_v23 = vadd.f32 %v918_v15, %v424_v22  ;;  %v484_v29 = vmax.f32 %v422_v19, 0.0  ;;  %v494_v34 = vmax.f32 %v462_v27, 0.0  ;;  %v465_v35 = vadd.f32 %v1010_v32, %v918_v15  ;;  %v456_v36 = vpop.f32.mrb[3].mxu1 }
  0xea   : > { %v487_v26 = vmax.f32 %v433_v21, 0.0  ;;  %v492_v39 = vmax.f32 %v454_v31, 0.0  ;;  %v457_v40 = vadd.f32 %v918_v15, %v456_v36 }
  0xeb   : > { %v485_v30 = vmax.f32 %v425_v23, 0.0  ;;  %v495_v43 = vmax.f32 %v465_v35, 0.0 }
  0xec   : > { %v501_v33 = vpack.c.bf16 %v487_v26, %v486_v25  ;;  %v493_v46 = vmax.f32 %v457_v40, 0.0 }
  0xed   : > { %v500_v37 = vpack.c.bf16 %v485_v30, %v484_v29  ;;  %v1005_v38 = vpop.f32.mrb[4].mxu0  ;;  %v505_v49 = vpack.c.bf16 %v495_v43, %v494_v34 }
  0xee   : > { %v446_v41 = vadd.f32 %v1005_v38, %v918_v15  ;;  %v437_v42 = vpop.f32.mrb[5].mxu0  ;;  %v504_v51 = vpack.c.bf16 %v493_v46, %v492_v39  ;;  %v1013_v52 = vpop.f32.mrb[4].mxu1 }
  0xef   : > { %v438_v44 = vadd.f32 %v918_v15, %v437_v42  ;;  %v1006_v45 = vpop.f32.mrb[6].mxu0  ;;  %1023 = vmatprep.mubr.msk.bf16.mxu1 %vm547_vm1, %v500_v37  ;;  %v478_v55 = vadd.f32 %v1013_v52, %v918_v15  ;;  %v469_v56 = vpop.f32.mrb[5].mxu1 }
  0xf0   : > { %v449_v47 = vadd.f32 %v1006_v45, %v918_v15  ;;  %v440_v48 = vpop.f32.mrb[7].mxu0  ;;  %1024 = vmatmul.mubr.msk.bf16.vlgmr.msra.gmra.mrb[8].mxu1 %vm547_vm1, %v501_v33  ;;  %v490_v53 = vmax.f32 %v446_v41, 0.0  ;;  %v470_v59 = vadd.f32 %v918_v15, %v469_v56  ;;  %v1014_v60 = vpop.f32.mrb[6].mxu1 }
  0xf1   : > { %v441_v50 = vadd.f32 %v918_v15, %v440_v48  ;;  %v488_v57 = vmax.f32 %v438_v44, 0.0  ;;  %v498_v62 = vmax.f32 %v478_v55, 0.0  ;;  %v481_v63 = vadd.f32 %v1014_v60, %v918_v15  ;;  %v472_v0 = vpop.f32.mrb[7].mxu1 }
  0xf2   : > { %v491_v54 = vmax.f32 %v449_v47, 0.0  ;;  %v496_v2 = vmax.f32 %v470_v59, 0.0  ;;  %v473_v3 = vadd.f32 %v918_v15, %v472_v0 }
  0xf3   : > { %v489_v58 = vmax.f32 %v441_v50, 0.0  ;;  %v499_v4 = vmax.f32 %v481_v63, 0.0 }
  0xf4   : > { %v503_v61 = vpack.c.bf16 %v491_v54, %v490_v53  ;;  %v497_v5 = vmax.f32 %v473_v3, 0.0 }
  0xf5   : > { %v502_v1 = vpack.c.bf16 %v489_v58, %v488_v57  ;;  %v507_v6 = vpack.c.bf16 %v499_v4, %v498_v62 }
  0xf6   : > { %v506_v7 = vpack.c.bf16 %v497_v5, %v496_v2  ;;  %v950_v2 = vld [vmem:[%s1237_s6] ss:$0 sm:$0xff] }
  0xf7   : > { %1027 = vmatprep.mubr.msk.bf16.mxu1 %vm547_vm1, %v502_v1 }
  0xf8   : > { %1028 = vmatmul.mubr.msk.bf16.gmra.mrb[12].mxu1 %vm547_vm1, %v503_v61 }
  0xf9   : > { %1031 = vmatprep.mubr.msk.bf16.mxu1 %vm547_vm1, %v504_v51 }
 0x100   : > { %1032 = vmatmul.mubr.msk.bf16.gmra.mrb[16].mxu1 %vm547_vm1, %v505_v49 }
 0x101   : > { %1035 = vmatprep.mubr.msk.bf16.mxu1 %vm547_vm1, %v506_v7 }
 0x108   : > { %1036 = vmatmul.mubr.msk.bf16.gmra.mrb[20].mxu1 %vm547_vm1, %v507_v6 }
 0x1c3   : > { %v1025_v10 = vpop.f32.mrb[8].mxu1 }
 0x1c4   : > { %v615_v11 = vadd.f32 %v1025_v10, %v937_v9  ;;  %v606_v12 = vpop.f32.mrb[9].mxu1 }
 0x1c5   : > { %v607_v13 = vadd.f32 %v937_v9, %v606_v12  ;;  %v1026_v14 = vpop.f32.mrb[10].mxu1 }
 0x1c6   : > { %v618_v15 = vadd.f32 %v1026_v14, %v937_v9  ;;  %v609_v16 = vpop.f32.mrb[11].mxu1  ;;  %v671_v18 = vmax.f32 %v615_v11, 0.0 }
 0x1c7   : > { %v610_v17 = vadd.f32 %v937_v9, %v609_v16  ;;  %v669_v20 = vmax.f32 %v607_v13, 0.0 }
 0x1c8   : > { %v672_v19 = vmax.f32 %v618_v15, 0.0 }
 0x1c9   : > { %v670_v21 = vmax.f32 %v610_v17, 0.0 }
 0x1ca   : > { %v686_v22 = vpack.c.bf16 %v672_v19, %v671_v18 }
 0x1cb   : > { %v685_v23 = vpack.c.bf16 %v670_v21, %v669_v20  ;;  %v1029_v24 = vpop.f32.mrb[12].mxu1 }
 0x1cc   : > { %v631_v25 = vadd.f32 %v1029_v24, %v937_v9  ;;  %v622_v26 = vpop.f32.mrb[13].mxu1 }
 0x1cd   : > { %v623_v27 = vadd.f32 %v937_v9, %v622_v26  ;;  %v1030_v28 = vpop.f32.mrb[14].mxu1  ;;  %1043 = vmatprep.mubr.msk.bf16.mxu0 %vm362_vm0, %v685_v23 }
 0x1ce   : > { %v634_v29 = vadd.f32 %v1030_v28, %v937_v9  ;;  %v625_v30 = vpop.f32.mrb[15].mxu1  ;;  %1044 = vmatmul.mubr.msk.bf16.vlgmr.msra.gmra.mrb[8].mxu0 %vm362_vm0, %v686_v22  ;;  %v675_v32 = vmax.f32 %v631_v25, 0.0 }
 0x1cf   : > { %v626_v31 = vadd.f32 %v937_v9, %v625_v30  ;;  %v673_v34 = vmax.f32 %v623_v27, 0.0 }
 0x1d0   : > { %v676_v33 = vmax.f32 %v634_v29, 0.0 }
 0x1d1   : > { %v674_v35 = vmax.f32 %v626_v31, 0.0 }
 0x1d2   : > { %v688_v36 = vpack.c.bf16 %v676_v33, %v675_v32 }
 0x1d3   : > { %v687_v37 = vpack.c.bf16 %v674_v35, %v673_v34  ;;  %v1033_v38 = vpop.f32.mrb[16].mxu1 }
 0x1d4   : > { %v647_v39 = vadd.f32 %v1033_v38, %v937_v9  ;;  %v638_v40 = vpop.f32.mrb[17].mxu1 }
 0x1d5   : > { %v639_v41 = vadd.f32 %v937_v9, %v638_v40  ;;  %v1034_v42 = vpop.f32.mrb[18].mxu1  ;;  %1047 = vmatprep.mubr.msk.bf16.mxu0 %vm362_vm0, %v687_v37 }
 0x1d6   : > { %v650_v43 = vadd.f32 %v1034_v42, %v937_v9  ;;  %v641_v44 = vpop.f32.mrb[19].mxu1  ;;  %1048 = vmatmul.mubr.msk.bf16.gmra.mrb[12].mxu0 %vm362_vm0, %v688_v36  ;;  %v679_v46 = vmax.f32 %v647_v39, 0.0 }
 0x1d7   : > { %v642_v45 = vadd.f32 %v937_v9, %v641_v44  ;;  %v677_v48 = vmax.f32 %v639_v41, 0.0 }
 0x1d8   : > { %v680_v47 = vmax.f32 %v650_v43, 0.0 }
 0x1d9   : > { %v678_v49 = vmax.f32 %v642_v45, 0.0 }
 0x1da   : > { %v690_v50 = vpack.c.bf16 %v680_v47, %v679_v46 }
 0x1db   : > { %v689_v51 = vpack.c.bf16 %v678_v49, %v677_v48  ;;  %v1037_v52 = vpop.f32.mrb[20].mxu1 }
 0x1dc   : > { %v663_v53 = vadd.f32 %v1037_v52, %v937_v9  ;;  %v654_v54 = vpop.f32.mrb[21].mxu1 }
 0x1dd   : > { %v655_v55 = vadd.f32 %v937_v9, %v654_v54  ;;  %v1038_v56 = vpop.f32.mrb[22].mxu1  ;;  %1051 = vmatprep.mubr.msk.bf16.mxu0 %vm362_vm0, %v689_v51 }
 0x1de   : > { %v666_v57 = vadd.f32 %v1038_v56, %v937_v9  ;;  %v657_v58 = vpop.f32.mrb[23].mxu1  ;;  %1052 = vmatmul.mubr.msk.bf16.gmra.mrb[16].mxu0 %vm362_vm0, %v690_v50  ;;  %v683_v60 = vmax.f32 %v663_v53, 0.0 }
 0x1df   : > { %v658_v59 = vadd.f32 %v937_v9, %v657_v58  ;;  %v681_v62 = vmax.f32 %v655_v55, 0.0 }
 0x1e0   : > { %v684_v61 = vmax.f32 %v666_v57, 0.0 }
 0x1e1   : > { %v682_v63 = vmax.f32 %v658_v59, 0.0 }
 0x1e2   : > { %v692_v0 = vpack.c.bf16 %v684_v61, %v683_v60 }
 0x1e3   : > { %v691_v1 = vpack.c.bf16 %v682_v63, %v681_v62 }
 0x1e5   : > { %1055 = vmatprep.mubr.msk.bf16.mxu0 %vm362_vm0, %v691_v1 }
 0x1e6   : > { %1056 = vmatmul.mubr.msk.bf16.gmra.mrb[20].mxu0 %vm362_vm0, %v692_v0 }
 0x2a1   : > { %v1045_v3 = vpop.f32.mrb[8].mxu0 }
 0x2a2   : > { %v783_v4 = vadd.f32 %v1045_v3, %v950_v2  ;;  %v774_v5 = vpop.f32.mrb[9].mxu0 }
 0x2a3   : > { %v775_v6 = vadd.f32 %v950_v2, %v774_v5  ;;  %v1046_v7 = vpop.f32.mrb[10].mxu0 }
 0x2a4   : > { %839 = vst [vmem:[%s1210_s12 + $0x10] sm:$0xff] %v783_v4  ;;  %v786_v8 = vadd.f32 %v1046_v7, %v950_v2  ;;  %v777_v9 = vpop.f32.mrb[11].mxu0 }
 0x2a5   : > { %837 = vst [vmem:[%s1210_s12] sm:$0xff] %v775_v6  ;;  %v778_v10 = vadd.f32 %v950_v2, %v777_v9 }
 0x2a6   : > { %840 = vst [vmem:[%s1210_s12 + $0x18] sm:$0xff] %v786_v8 }
 0x2a7   : > { %838 = vst [vmem:[%s1210_s12 + $0x8] sm:$0xff] %v778_v10 }
 0x2a9   : > { %v1049_v11 = vpop.f32.mrb[12].mxu0 }
 0x2aa   : > { %v799_v12 = vadd.f32 %v1049_v11, %v950_v2  ;;  %v790_v13 = vpop.f32.mrb[13].mxu0 }
 0x2ab   : > { %v791_v14 = vadd.f32 %v950_v2, %v790_v13  ;;  %v1050_v15 = vpop.f32.mrb[14].mxu0 }
 0x2ac   : > { %843 = vst [vmem:[%s1210_s12 + $0x30] sm:$0xff] %v799_v12  ;;  %v802_v16 = vadd.f32 %v1050_v15, %v950_v2  ;;  %v793_v17 = vpop.f32.mrb[15].mxu0 }
 0x2ad   : > { %841 = vst [vmem:[%s1210_s12 + $0x20] sm:$0xff] %v791_v14  ;;  %v794_v18 = vadd.f32 %v950_v2, %v793_v17 }
 0x2ae   : > { %844 = vst [vmem:[%s1210_s12 + $0x38] sm:$0xff] %v802_v16 }
 0x2af   : > { %842 = vst [vmem:[%s1210_s12 + $0x28] sm:$0xff] %v794_v18 }
 0x2b1   : > { %v1053_v19 = vpop.f32.mrb[16].mxu0 }
 0x2b2   : > { %v815_v20 = vadd.f32 %v1053_v19, %v950_v2  ;;  %v806_v21 = vpop.f32.mrb[17].mxu0 }
 0x2b3   : > { %v807_v22 = vadd.f32 %v950_v2, %v806_v21  ;;  %v1054_v23 = vpop.f32.mrb[18].mxu0 }
 0x2b4   : > { %847 = vst [vmem:[%s1210_s12 + $0x50] sm:$0xff] %v815_v20  ;;  %v818_v24 = vadd.f32 %v1054_v23, %v950_v2  ;;  %v809_v25 = vpop.f32.mrb[19].mxu0 }
 0x2b5   : > { %845 = vst [vmem:[%s1210_s12 + $0x40] sm:$0xff] %v807_v22  ;;  %v810_v26 = vadd.f32 %v950_v2, %v809_v25 }
 0x2b6   : > { %848 = vst [vmem:[%s1210_s12 + $0x58] sm:$0xff] %v818_v24 }
 0x2b7   : > { %846 = vst [vmem:[%s1210_s12 + $0x48] sm:$0xff] %v810_v26 }
 0x2b9   : > { %v1057_v27 = vpop.f32.mrb[20].mxu0 }
 0x2ba   : > { %v831_v28 = vadd.f32 %v1057_v27, %v950_v2  ;;  %v822_v29 = vpop.f32.mrb[21].mxu0 }
 0x2bb   : > { %v823_v30 = vadd.f32 %v950_v2, %v822_v29  ;;  %v1058_v31 = vpop.f32.mrb[22].mxu0 }
 0x2bc   : > { %851 = vst [vmem:[%s1210_s12 + $0x70] sm:$0xff] %v831_v28  ;;  %v834_v32 = vadd.f32 %v1058_v31, %v950_v2  ;;  %v825_v33 = vpop.f32.mrb[23].mxu0 }
 0x2bd   : > { %849 = vst [vmem:[%s1210_s12 + $0x60] sm:$0xff] %v823_v30  ;;  %v826_v34 = vadd.f32 %v950_v2, %v825_v33 }
 0x2be   : > { %852 = vst [vmem:[%s1210_s12 + $0x78] sm:$0xff] %v834_v32 }
 0x2bf   : > { %850 = vst [vmem:[%s1210_s12 + $0x68] sm:$0xff] %v826_v34 }
 0x2c0 PF: > { %s17_s24 = sadd.s32 1, %s1093_s24  }
 0x2c1   : > { %p14_p4 = scmp.ge.s32.totalorder %s17_s24, 4  }
 0x2c3   :  { %16 = sbr.rel (!%p14_p4) target bundleno = 1 (0x1), region = 78 }

</bundles_post_ra>
